<compile_context>
chip_gen: v7x
topology: tpu7x:2x2x1
jax: 0.10.0
libtpu: 0.0.40
codegen_flags: <defaults>
</compile_context>

<pallas_src>
import functools

import numpy as np
import jax
import jax.numpy as jnp
from jax.experimental import pallas as pl
from jax.experimental.pallas import tpu as pltpu


def _round_up(x, m):
    return (x + m - 1) // m * m


def disc_kernel(ids_ref, tab_ref, wconv_ref, bconv_ref, mask_ref,
                hww_ref, hwb_ref, linw_ref, linb_ref, out_ref,
                *, seq_len, seq_pad, max_f, f_pad):
    """Fused gather + conv + relu + max-pool + highway + linear + log-softmax."""
    V, E = tab_ref.shape
    TB = out_ref.shape[0]                      # batch tile

    # ---- embedding gather as one-hot matmul (padded/out-of-range ids -> all-zero row) ----
    ids = ids_ref[...]                                                  # (TB*seq_pad, 1) int32
    vocab_iota = jax.lax.broadcasted_iota(jnp.int32, (TB * seq_pad, V), 1)
    onehot = (ids == vocab_iota).astype(jnp.float32)                    # (TB*seq_pad, V)
    emb = jnp.dot(onehot, tab_ref[...],
                  preferred_element_type=jnp.float32)                   # (TB*seq_pad, E)

    # ---- single packed conv matmul: tap i occupies lanes [i*f_pad, (i+1)*f_pad) ----
    p = jnp.dot(emb, wconv_ref[...],
                preferred_element_type=jnp.float32)                     # (TB*seq_pad, max_f*f_pad)
    p = p.reshape(TB, seq_pad, max_f * f_pad)

    # combine taps with shifted sublane adds (time axis), 128-lane-aligned slabs
    acc = jnp.zeros((TB, seq_len, f_pad), jnp.float32)
    for i in range(max_f):
        acc = acc + p[:, i:i + seq_len, i * f_pad:(i + 1) * f_pad]

    # ReLU + per-filter validity mask (invalid time positions -> 0), max-pool over time.
    # (max init at 0 is exact because ReLU output >= 0.)
    conv = jnp.maximum(acc + bconv_ref[...], 0.0) * mask_ref[...]       # (TB, seq_len, f_pad)
    pred = jnp.max(conv, axis=1)                                        # (TB, f_pad)

    # ---- highway: sigmoid(h)*relu(h) + (1-sigmoid(h))*pred (padded lanes stay 0) ----
    hw = jnp.dot(pred, hww_ref[...], preferred_element_type=jnp.float32) + hwb_ref[...]
    sig = jax.nn.sigmoid(hw)
    pred = sig * jnp.maximum(hw, 0.0) + (1.0 - sig) * pred

    # TODO(synk): nn.Dropout is identity here (inference/eval semantics).

    # ---- final linear + log-softmax over classes ----
    logits = jnp.dot(pred, linw_ref[...], preferred_element_type=jnp.float32) + linb_ref[...]
    m = jnp.max(logits, axis=-1, keepdims=True)
    lse = m + jnp.log(jnp.sum(jnp.exp(logits - m), axis=-1, keepdims=True))
    out_ref[...] = logits - lse


def discriminator_forward(x, params, filter_sizes):
    """x: (B, S) int32 token ids. Returns (log_probs (B, C), [], [])."""
    B, S = x.shape
    V, E = params["emb"].shape
    C = params["lin_w"].shape[1]
    num_filters = [params[f"conv_w_{k}"].shape[-1] for k in range(len(filter_sizes))]
    F_total = sum(num_filters)
    max_f = max(filter_sizes)

    F_pad = _round_up(max(F_total, 1), 128)            # lane-dense feature slab
    S_pad = _round_up(S + max_f - 1, 8)                # time padding (taps stay in-bounds)
    TILE_B = min(_round_up(B, 8), 64)                  # batch tile (fits VMEM comfortably)
    B_pad = _round_up(B, TILE_B)

    # ---- token ids, padded with -1 (one-hot row becomes all zero) ----
    ids = jnp.full((B_pad, S_pad), -1, jnp.int32)
    ids = ids.at[:B, :S].set(x.astype(jnp.int32))
    ids_flat = ids.reshape(B_pad * S_pad, 1)

    # ---- pack conv weights/bias + validity mask ----
    wconv = jnp.zeros((E, max_f * F_pad), jnp.float32)
    bconv = jnp.zeros((1, F_pad), jnp.float32)
    mask_np = np.zeros((S, F_pad), np.float32)
    off = 0
    for k, f in enumerate(filter_sizes):
        w = params[f"conv_w_{k}"].astype(jnp.float32)          # (f, E, nf)
        nf = w.shape[-1]
        for i in range(f):
            wconv = wconv.at[:, i * F_pad + off:i * F_pad + off + nf].set(w[i])
        bconv = bconv.at[0, off:off + nf].set(params[f"conv_b_{k}"].reshape(-1))
        mask_np[:S - f + 1, off:off + nf] = 1.0
        off += nf
    mask = jnp.asarray(mask_np)

    # ---- pad highway / classifier weights to the 128-wide slab (extra lanes stay 0) ----
    hw_w = jnp.zeros((F_pad, F_pad), jnp.float32).at[:F_total, :F_total].set(params["hw_w"])
    hw_b = jnp.zeros((1, F_pad), jnp.float32).at[:, :F_total].set(params["hw_b"])
    lin_w = jnp.zeros((F_pad, C), jnp.float32).at[:F_total, :].set(params["lin_w"])
    lin_b = params["lin_b"].reshape(1, C).astype(jnp.float32)

    kernel = functools.partial(disc_kernel, seq_len=S, seq_pad=S_pad,
                               max_f=max_f, f_pad=F_pad)

    def full_spec(shape):
        return pl.BlockSpec(shape, lambda i, _n=len(shape): (0,) * _n)

    out = pl.pallas_call(
        kernel,
        out_shape=jax.ShapeDtypeStruct((B_pad, C), jnp.float32),
        grid=(B_pad // TILE_B,),
        in_specs=[
            pl.BlockSpec((TILE_B * S_pad, 1), lambda i: (i, 0)),   # token ids (batch-tiled)
            full_spec((V, E)),                                     # embedding table
            full_spec((E, max_f * F_pad)),                         # packed conv weights
            full_spec((1, F_pad)),                                 # packed conv bias
            full_spec((S, F_pad)),                                 # validity mask
            full_spec((F_pad, F_pad)),                             # highway weight (padded)
            full_spec((1, F_pad)),                                 # highway bias (padded)
            full_spec((F_pad, C)),                                 # classifier weight (padded)
            full_spec((1, C)),                                     # classifier bias
        ],
        out_specs=pl.BlockSpec((TILE_B, C), lambda i: (i, 0)),
        compiler_params=pltpu.CompilerParams(
            dimension_semantics=("parallel",),
            vmem_limit_bytes=32 * 1024 * 1024,
        ),
    )(ids_flat, params["emb"].astype(jnp.float32), wconv, bconv, mask,
      hw_w, hw_b, lin_w, lin_b)

    return out[:B], [], []


def reference_forward(x, params, filter_sizes):
    """Pure-JAX reference for correctness checking."""
    emb = jnp.take(params["emb"], x, axis=0)
    S = emb.shape[1]
    pools = []
    for k, f in enumerate(filter_sizes):
        w, b = params[f"conv_w_{k}"], params[f"conv_b_{k}"]
        vals = []
        for t in range(S - f + 1):
            v = jnp.einsum("bie,ien->bn", emb[:, t:t + f, :], w) + b
            vals.append(jnp.maximum(v, 0.0))
        pools.append(jnp.max(jnp.stack(vals, axis=0), axis=0))
    pred = jnp.concatenate(pools, axis=1)
    hw = pred @ params["hw_w"] + params["hw_b"]
    sig = jax.nn.sigmoid(hw)
    pred = sig * jnp.maximum(hw, 0.0) + (1.0 - sig) * pred
    logits = pred @ params["lin_w"] + params["lin_b"]
    return jax.nn.log_softmax(logits, axis=-1)


if __name__ == "__main__":
    # Small shapes consistent with the module.
    num_classes = 2
    vocab_size = 32
    emb_dim = 16
    filter_sizes = (2, 3, 4)
    num_filters = (3, 4, 5)
    batch, seq_len = 2, 8
    F_total = sum(num_filters)

    key = jax.random.PRNGKey(0)
    keys = jax.random.split(key, 16)

    def u(k, shape):  # uniform(-0.05, 0.05), matching init_parameters()
        return jax.random.uniform(k, shape, jnp.float32, -0.05, 0.05)

    params = {"emb": u(keys[0], (vocab_size, emb_dim))}
    for i, (nf, f) in enumerate(zip(num_filters, filter_sizes)):
        params[f"conv_w_{i}"] = u(keys[1 + 2 * i], (f, emb_dim, nf))   # torch (nf,1,f,E) transposed
        params[f"conv_b_{i}"] = u(keys[2 + 2 * i], (1, nf))
    params["hw_w"] = u(keys[10], (F_total, F_total))                   # torch weight.T
    params["hw_b"] = u(keys[11], (1, F_total))
    params["lin_w"] = u(keys[12], (F_total, num_classes))              # torch weight.T
    params["lin_b"] = u(keys[13], (1, num_classes))

    # Main (toy-shape) check.
    x = jax.random.randint(keys[14], (batch, seq_len), 0, vocab_size, dtype=jnp.int32)
    log_probs, _, _ = discriminator_forward(x, params, filter_sizes)
    log_probs = jax.block_until_ready(log_probs)
    ref = reference_forward(x, params, filter_sizes)
    assert log_probs.shape == (batch, num_classes)
    assert jnp.allclose(log_probs, ref, atol=1e-4, rtol=1e-4)

    # Larger batch exercises the batch grid (2 tiles), batch/seq padding paths.
    x2 = jax.random.randint(keys[15], (80, 10), 0, vocab_size, dtype=jnp.int32)
    log_probs2, _, _ = discriminator_forward(x2, params, filter_sizes)
    log_probs2 = jax.block_until_ready(log_probs2)
    ref2 = reference_forward(x2, params, filter_sizes)
    assert log_probs2.shape == (80, num_classes)
    assert jnp.allclose(log_probs2, ref2, atol=1e-4, rtol=1e-4)

    print("KERNEL_OK")
</pallas_src>

<mosaic_0001>
module attributes {stable_mosaic.version = 11 : i64} {
  func.func @disc_kernel(%arg0: i32, %arg1: memref<128x1xi32, #tpu.memory_space<vmem>>, %arg2: memref<32x16xf32, #tpu.memory_space<vmem>>, %arg3: memref<16x512xf32, #tpu.memory_space<vmem>>, %arg4: memref<1x128xf32, #tpu.memory_space<vmem>>, %arg5: memref<8x128xf32, #tpu.memory_space<vmem>>, %arg6: memref<128x128xf32, #tpu.memory_space<vmem>>, %arg7: memref<1x128xf32, #tpu.memory_space<vmem>>, %arg8: memref<128x2xf32, #tpu.memory_space<vmem>>, %arg9: memref<1x2xf32, #tpu.memory_space<vmem>>, %arg10: memref<8x2xf32, #tpu.memory_space<vmem>>) attributes {dimension_semantics = [#tpu.dimension_semantics<parallel>], iteration_bounds = array<i64: 1>, scalar_prefetch = 0 : i64, scratch_operands = 0 : i64, tpu.core_type = #tpu.core_type<tc>, window_params = [{transform_indices = @transform_0, window_bounds = array<i64: 128, 1>}, {pipeline_mode = #tpu.pipeline_mode<synchronous>, transform_indices = @transform_1, window_bounds = array<i64: 32, 16>}, {pipeline_mode = #tpu.pipeline_mode<synchronous>, transform_indices = @transform_2, window_bounds = array<i64: 16, 512>}, {pipeline_mode = #tpu.pipeline_mode<synchronous>, transform_indices = @transform_3, window_bounds = array<i64: 1, 128>}, {pipeline_mode = #tpu.pipeline_mode<synchronous>, transform_indices = @transform_4, window_bounds = array<i64: 8, 128>}, {pipeline_mode = #tpu.pipeline_mode<synchronous>, transform_indices = @transform_5, window_bounds = array<i64: 128, 128>}, {pipeline_mode = #tpu.pipeline_mode<synchronous>, transform_indices = @transform_6, window_bounds = array<i64: 1, 128>}, {pipeline_mode = #tpu.pipeline_mode<synchronous>, transform_indices = @transform_7, window_bounds = array<i64: 128, 2>}, {pipeline_mode = #tpu.pipeline_mode<synchronous>, transform_indices = @transform_8, window_bounds = array<i64: 1, 2>}, {transform_indices = @transform_9, window_bounds = array<i64: 8, 2>}]} {
    %c0 = arith.constant 0 : index
    %c0_0 = arith.constant 0 : index
    %0 = vector.load %arg1[%c0, %c0_0] : memref<128x1xi32, #tpu.memory_space<vmem>>, vector<128x1xi32>
    %1 = tpu.iota {dimensions = array<i32: 1>} : vector<128x32xi32>
    %2 = vector.broadcast %0 : vector<128x1xi32> to vector<128x32xi32>
    %3 = arith.cmpi eq, %2, %1 : vector<128x32xi32>
    %4 = arith.extui %3 : vector<128x32xi1> to vector<128x32xi32>
    %5 = arith.sitofp %4 : vector<128x32xi32> to vector<128x32xf32>
    %c0_1 = arith.constant 0 : index
    %c0_2 = arith.constant 0 : index
    %6 = vector.load %arg2[%c0_1, %c0_2] : memref<32x16xf32, #tpu.memory_space<vmem>>, vector<32x16xf32>
    %cst = arith.constant dense<0.000000e+00> : vector<128x16xf32>
    %7 = tpu.matmul %5, %6, %cst {dimension_numbers = #tpu.dot_dimension_numbers<[1], [0], [0], [1], [0, 0, 1, 1], [], []>} : vector<128x32xf32>, vector<32x16xf32>, vector<128x16xf32> -> vector<128x16xf32>
    %c0_3 = arith.constant 0 : index
    %c0_4 = arith.constant 0 : index
    %8 = vector.load %arg3[%c0_3, %c0_4] : memref<16x512xf32, #tpu.memory_space<vmem>>, vector<16x512xf32>
    %cst_5 = arith.constant dense<0.000000e+00> : vector<128x512xf32>
    %9 = tpu.matmul %7, %8, %cst_5 {dimension_numbers = #tpu.dot_dimension_numbers<[1], [0], [0], [1], [0, 0, 1, 1], [], []>} : vector<128x16xf32>, vector<16x512xf32>, vector<128x512xf32> -> vector<128x512xf32>
    %10 = vector.shape_cast %9 : vector<128x512xf32> to vector<8x16x512xf32>
    %cst_6 = arith.constant 0.000000e+00 : f32
    %11 = vector.broadcast %cst_6 : f32 to vector<8x8x128xf32>
    %12 = vector.extract_strided_slice %10 {offsets = [0, 0, 0], sizes = [8, 8, 128], strides = [1, 1, 1]} : vector<8x16x512xf32> to vector<8x8x128xf32>
    %13 = arith.addf %11, %12 : vector<8x8x128xf32>
    %14 = vector.extract_strided_slice %10 {offsets = [0, 1, 128], sizes = [8, 8, 128], strides = [1, 1, 1]} : vector<8x16x512xf32> to vector<8x8x128xf32>
    %15 = arith.addf %13, %14 : vector<8x8x128xf32>
    %16 = vector.extract_strided_slice %10 {offsets = [0, 2, 256], sizes = [8, 8, 128], strides = [1, 1, 1]} : vector<8x16x512xf32> to vector<8x8x128xf32>
    %17 = arith.addf %15, %16 : vector<8x8x128xf32>
    %18 = vector.extract_strided_slice %10 {offsets = [0, 3, 384], sizes = [8, 8, 128], strides = [1, 1, 1]} : vector<8x16x512xf32> to vector<8x8x128xf32>
    %19 = arith.addf %17, %18 : vector<8x8x128xf32>
    %c0_7 = arith.constant 0 : index
    %c0_8 = arith.constant 0 : index
    %20 = vector.load %arg4[%c0_7, %c0_8] : memref<1x128xf32, #tpu.memory_space<vmem>>, vector<1x128xf32>
    %21 = vector.shape_cast %20 : vector<1x128xf32> to vector<1x1x128xf32>
    %22 = vector.broadcast %21 : vector<1x1x128xf32> to vector<8x8x128xf32>
    %23 = arith.addf %19, %22 : vector<8x8x128xf32>
    %cst_9 = arith.constant 0.000000e+00 : f32
    %24 = vector.broadcast %cst_9 : f32 to vector<8x8x128xf32>
    %25 = arith.maximumf %23, %24 : vector<8x8x128xf32>
    %c0_10 = arith.constant 0 : index
    %c0_11 = arith.constant 0 : index
    %26 = vector.load %arg5[%c0_10, %c0_11] : memref<8x128xf32, #tpu.memory_space<vmem>>, vector<8x128xf32>
    %27 = vector.shape_cast %26 : vector<8x128xf32> to vector<1x8x128xf32>
    %28 = vector.broadcast %27 : vector<1x8x128xf32> to vector<8x8x128xf32>
    %29 = arith.mulf %25, %28 : vector<8x8x128xf32>
    %cst_12 = arith.constant dense<0xFF800000> : vector<8x128xf32>
    %30 = vector.multi_reduction <maximumf>, %29, %cst_12 [1] : vector<8x8x128xf32> to vector<8x128xf32>
    %c0_13 = arith.constant 0 : index
    %c0_14 = arith.constant 0 : index
    %31 = vector.load %arg6[%c0_13, %c0_14] : memref<128x128xf32, #tpu.memory_space<vmem>>, vector<128x128xf32>
    %cst_15 = arith.constant dense<0.000000e+00> : vector<8x128xf32>
    %32 = tpu.matmul %30, %31, %cst_15 {dimension_numbers = #tpu.dot_dimension_numbers<[1], [0], [0], [1], [0, 0, 1, 1], [], []>} : vector<8x128xf32>, vector<128x128xf32>, vector<8x128xf32> -> vector<8x128xf32>
    %c0_16 = arith.constant 0 : index
    %c0_17 = arith.constant 0 : index
    %33 = vector.load %arg7[%c0_16, %c0_17] : memref<1x128xf32, #tpu.memory_space<vmem>>, vector<1x128xf32>
    %34 = vector.broadcast %33 : vector<1x128xf32> to vector<8x128xf32>
    %35 = arith.addf %32, %34 : vector<8x128xf32>
    %36 = arith.negf %35 : vector<8x128xf32>
    %37 = math.exp %36 : vector<8x128xf32>
    %cst_18 = arith.constant 1.000000e+00 : f32
    %38 = vector.broadcast %cst_18 : f32 to vector<8x128xf32>
    %39 = arith.addf %38, %37 : vector<8x128xf32>
    %40 = arith.divf %38, %39 : vector<8x128xf32>
    %cst_19 = arith.constant 0.000000e+00 : f32
    %41 = vector.broadcast %cst_19 : f32 to vector<8x128xf32>
    %42 = arith.maximumf %35, %41 : vector<8x128xf32>
    %43 = arith.mulf %40, %42 : vector<8x128xf32>
    %cst_20 = arith.constant 1.000000e+00 : f32
    %44 = vector.broadcast %cst_20 : f32 to vector<8x128xf32>
    %45 = arith.subf %44, %40 : vector<8x128xf32>
    %46 = arith.mulf %45, %30 : vector<8x128xf32>
    %47 = arith.addf %43, %46 : vector<8x128xf32>
    %c0_21 = arith.constant 0 : index
    %c0_22 = arith.constant 0 : index
    %48 = vector.load %arg8[%c0_21, %c0_22] : memref<128x2xf32, #tpu.memory_space<vmem>>, vector<128x2xf32>
    %cst_23 = arith.constant dense<0.000000e+00> : vector<8x2xf32>
    %49 = tpu.matmul %47, %48, %cst_23 {dimension_numbers = #tpu.dot_dimension_numbers<[1], [0], [0], [1], [0, 0, 1, 1], [], []>} : vector<8x128xf32>, vector<128x2xf32>, vector<8x2xf32> -> vector<8x2xf32>
    %c0_24 = arith.constant 0 : index
    %c0_25 = arith.constant 0 : index
    %50 = vector.load %arg9[%c0_24, %c0_25] : memref<1x2xf32, #tpu.memory_space<vmem>>, vector<1x2xf32>
    %51 = vector.broadcast %50 : vector<1x2xf32> to vector<8x2xf32>
    %52 = arith.addf %49, %51 : vector<8x2xf32>
    %cst_26 = arith.constant dense<0xFF800000> : vector<8xf32>
    %53 = vector.multi_reduction <maximumf>, %52, %cst_26 [1] : vector<8x2xf32> to vector<8xf32>
    %54 = vector.shape_cast %53 : vector<8xf32> to vector<8x1xf32>
    %55 = vector.broadcast %54 : vector<8x1xf32> to vector<8x2xf32>
    %56 = arith.subf %52, %55 : vector<8x2xf32>
    %57 = math.exp %56 : vector<8x2xf32>
    %cst_27 = arith.constant dense<0.000000e+00> : vector<8xf32>
    %58 = vector.multi_reduction <add>, %57, %cst_27 [1] : vector<8x2xf32> to vector<8xf32>
    %59 = vector.shape_cast %58 : vector<8xf32> to vector<8x1xf32>
    %60 = math.log %59 : vector<8x1xf32>
    %61 = arith.addf %54, %60 : vector<8x1xf32>
    %62 = vector.broadcast %61 : vector<8x1xf32> to vector<8x2xf32>
    %63 = arith.subf %52, %62 : vector<8x2xf32>
    %c0_28 = arith.constant 0 : index
    %c0_29 = arith.constant 0 : index
    %64 = vector.load %arg10[%c0_28, %c0_29] : memref<8x2xf32, #tpu.memory_space<vmem>>, vector<8x2xf32>
    tpu.vector_store %arg10[%c0_28, %c0_29], %63 {strides = array<i32>} : memref<8x2xf32, #tpu.memory_space<vmem>>, vector<8x2xf32>,
    return
  }
  func.func @transform_0(%arg0: i32) -> (i32, i32) {
    %c0_i32 = arith.constant 0 : i32
    %c0_i32_0 = arith.constant 0 : i32
    return %arg0, %c0_i32 : i32, i32
  }
  func.func @transform_1(%arg0: i32) -> (i32, i32) {
    %c0_i32 = arith.constant 0 : i32
    %c0_i32_0 = arith.constant 0 : i32
    %c0_i32_1 = arith.constant 0 : i32
    return %c0_i32, %c0_i32_0 : i32, i32
  }
  func.func @transform_2(%arg0: i32) -> (i32, i32) {
    %c0_i32 = arith.constant 0 : i32
    %c0_i32_0 = arith.constant 0 : i32
    %c0_i32_1 = arith.constant 0 : i32
    return %c0_i32, %c0_i32_0 : i32, i32
  }
  func.func @transform_3(%arg0: i32) -> (i32, i32) {
    %c0_i32 = arith.constant 0 : i32
    %c0_i32_0 = arith.constant 0 : i32
    %c0_i32_1 = arith.constant 0 : i32
    return %c0_i32, %c0_i32_0 : i32, i32
  }
  func.func @transform_4(%arg0: i32) -> (i32, i32) {
    %c0_i32 = arith.constant 0 : i32
    %c0_i32_0 = arith.constant 0 : i32
    %c0_i32_1 = arith.constant 0 : i32
    return %c0_i32, %c0_i32_0 : i32, i32
  }
  func.func @transform_5(%arg0: i32) -> (i32, i32) {
    %c0_i32 = arith.constant 0 : i32
    %c0_i32_0 = arith.constant 0 : i32
    %c0_i32_1 = arith.constant 0 : i32
    return %c0_i32, %c0_i32_0 : i32, i32
  }
  func.func @transform_6(%arg0: i32) -> (i32, i32) {
    %c0_i32 = arith.constant 0 : i32
    %c0_i32_0 = arith.constant 0 : i32
    %c0_i32_1 = arith.constant 0 : i32
    return %c0_i32, %c0_i32_0 : i32, i32
  }
  func.func @transform_7(%arg0: i32) -> (i32, i32) {
    %c0_i32 = arith.constant 0 : i32
    %c0_i32_0 = arith.constant 0 : i32
    %c0_i32_1 = arith.constant 0 : i32
    return %c0_i32, %c0_i32_0 : i32, i32
  }
  func.func @transform_8(%arg0: i32) -> (i32, i32) {
    %c0_i32 = arith.constant 0 : i32
    %c0_i32_0 = arith.constant 0 : i32
    %c0_i32_1 = arith.constant 0 : i32
    return %c0_i32, %c0_i32_0 : i32, i32
  }
  func.func @transform_9(%arg0: i32) -> (i32, i32) {
    %c0_i32 = arith.constant 0 : i32
    %c0_i32_0 = arith.constant 0 : i32
    return %arg0, %c0_i32 : i32, i32
  }
}

</mosaic_0001>

<bundles_post_ra>
// kernel: tpu_custom_call.1
= control target key start
LH: loop header
LB: loop body
LE: loop exit
PB: predicated region body
PF: predicated region fallthrough
CT: control target
= control target key end

     0   :  { %v1515_v0 = vmov 0   ;;  %v1516_v5 = vmov 0.0   ;;  %v48_v33 = vlaneseq  ;;  %vm150_vm0 = vcmask 261120   ;;  %s1949_s0 = inlined_call_operand.vmem [shape: s32[128,1], index: 0, kind: input, shape index: {}]   ;;  %s1950_s1 = inlined_call_operand.vmem [shape: f32[32,16], index: 1, kind: input, shape index: {}]   ;;  %s1951_s2 = inlined_call_operand.vmem [shape: f32[16,512], index: 2, kind: input, shape index: {}]   ;;  %s1952_s5 = inlined_call_operand.vmem [shape: f32[128,128], index: 5, kind: input, shape index: {}]   ;;  %s1953_s3 = inlined_call_operand.vmem [shape: f32[1,128], index: 3, kind: input, shape index: {}]   ;;  %s1954_s4 = inlined_call_operand.vmem [shape: f32[8,128], index: 4, kind: input, shape index: {}]   ;;  %s1955_s7 = inlined_call_operand.vmem [shape: f32[128,2], index: 7, kind: input, shape index: {}]   ;;  %s1956_s6 = inlined_call_operand.vmem [shape: f32[1,128], index: 6, kind: input, shape index: {}]   ;;  %s1957_s8 = inlined_call_operand.vmem [shape: f32[1,2], index: 8, kind: input, shape index: {}]   ;;  %s1958_s9 = inlined_call_operand.vmem [shape: f32[8,2], index: 9, kind: output, shape index: {}]  }
   0x1   :  { %1506 = vset.pattern.permute.xlu1 %v1515_v0  ;;  %1505 = vset.pattern.permute.xlu0 %v1515_v0  ;;  %v34_v1 = vld [vmem:[%s1949_s0 + $0x10] sm:$0xff]  ;;  %v32_v2 = vld [vmem:[%s1949_s0] sm:$0xff]  ;;  %v35_v3 = vld [vmem:[%s1949_s0 + $0x18] sm:$0xff] }
   0x2   :  { %57 = vperm.xlu1 %1506, %v34_v1   ;;  %51 = vperm.xlu0 %1505, %v32_v2   ;;  %v33_v4 = vld [vmem:[%s1949_s0 + $0x8] sm:$0xff]  ;;  %v146_v7 = vld [vmem:[%s1950_s1] sm:$0xff]  ;;  %v148_v11 = vld [vmem:[%s1950_s1 + $0x10] sm:$0xff]  ;;  %v1648_v34 = vand.u32 127, %v48_v33 }
   0x3   :  { %465 = vmatprep.mubr.f32.mxu1 %v1516_v5  ;;  %v37_v6 = vld [vmem:[%s1949_s0 + $0x28] sm:$0xff]  ;;  %v36_v9 = vld [vmem:[%s1949_s0 + $0x20] sm:$0xff]  ;;  %v149_v12 = vld [vmem:[%s1950_s1 + $0x18] sm:$0xff] }
   0x4   :  { %v147_v8 = vld [vmem:[%s1950_s1 + $0x8] sm:$0xff]  ;;  %v1441_v13 = vpack.c.bf16 %v149_v12, %v148_v11  ;;  %v39_v14 = vld [vmem:[%s1949_s0 + $0x38] sm:$0xff]  ;;  %v38_v15 = vld [vmem:[%s1949_s0 + $0x30] sm:$0xff] }
   0x5   :  { %v1437_v10 = vpack.c.bf16 %v147_v8, %v146_v7  ;;  %v41_v16 = vld [vmem:[%s1949_s0 + $0x48] sm:$0xff]  ;;  %v40_v17 = vld [vmem:[%s1949_s0 + $0x40] sm:$0xff]  ;;  %v43_v18 = vld [vmem:[%s1949_s0 + $0x58] sm:$0xff] }
   0x6   :  { %60 = vperm.xlu1 %1506, %v35_v3   ;;  %54 = vperm.xlu0 %1505, %v33_v4   ;;  %v42_v19 = vld [vmem:[%s1949_s0 + $0x50] sm:$0xff]  ;;  %v45_v20 = vld [vmem:[%s1949_s0 + $0x68] sm:$0xff]  ;;  %v44_v21 = vld [vmem:[%s1949_s0 + $0x60] sm:$0xff] }
   0x7   :  { %1438 = vmatprep.subr.bf16.mxu0 %v1437_v10  ;;  %v47_v22 = vld [vmem:[%s1949_s0 + $0x78] sm:$0xff]  ;;  %v46_v23 = vld [vmem:[%s1949_s0 + $0x70] sm:$0xff]  ;;  %v345_v27 = vld [vmem:[%s1951_s2 + $0x8] sm:$0xff] }
   0x8   :  { %1440 = vmatpush3.bf16.msra.mxu0 %v1437_v10  ;;  %v347_v24 = vld [vmem:[%s1951_s2 + $0x18] sm:$0xff]  ;;  %v349_v28 = vld [vmem:[%s1951_s2 + $0x28] sm:$0xff]  ;;  %v344_v30 = vld [vmem:[%s1951_s2] sm:$0xff] }
   0x9   :  { %1442 = vmatprep.subr.bf16.mxu0 %v1441_v13  ;;  %v351_v25 = vld [vmem:[%s1951_s2 + $0x38] sm:$0xff]  ;;  %v1445_v29 = vpack.c.bf16 %v349_v28, %v345_v27  ;;  %v348_v31 = vld [vmem:[%s1951_s2 + $0x20] sm:$0xff]  ;;  %v346_v37 = vld [vmem:[%s1951_s2 + $0x10] sm:$0xff] }
   0xa   :  { %66 = vperm.xlu1 %1506, %v37_v6   ;;  %63 = vperm.xlu0 %1505, %v36_v9   ;;  %v1449_v26 = vpack.c.bf16 %v351_v25, %v347_v24  ;;  %v1447_v32 = vpack.c.bf16 %v348_v31, %v344_v30  ;;  %v350_v38 = vld [vmem:[%s1951_s2 + $0x30] sm:$0xff]  ;;  %v974_v24 = vld [vmem:[%s1952_s5] sm:$0xff]  ;;  %v975_v25 = vld [vmem:[%s1952_s5 + $0x8] sm:$0xff] }
   0xb   :  { %1446 = vmatprep.subr.bf16.mxu1 %v1445_v29  ;;  %v1451_v42 = vpack.c.bf16 %v350_v38, %v346_v37  ;;  %v976_v27 = vld [vmem:[%s1952_s5 + $0x10] sm:$0xff]  ;;  %v977_v28 = vld [vmem:[%s1952_s5 + $0x18] sm:$0xff]  ;;  %v978_v30 = vld [vmem:[%s1952_s5 + $0x20] sm:$0xff] }
   0xc   :  { %1444 = vmatpush3.bf16.msra.mxu0 %v1441_v13  ;;  %1448 = vmatpush1.bf16.msra.mxu1 %v1447_v32  ;;  %v1457_v29 = vpack.c.bf16 %v977_v28, %v976_v27  ;;  %v979_v31 = vld [vmem:[%s1952_s5 + $0x28] sm:$0xff]  ;;  %v980_v33 = vld [vmem:[%s1952_s5 + $0x30] sm:$0xff] }
   0xd   :  { %1450 = vmatprep.subr.bf16.mxu0 %v1449_v26  ;;  %v1454_v26 = vpack.c.bf16 %v975_v25, %v974_v24  ;;  %v1460_v32 = vpack.c.bf16 %v979_v31, %v978_v30  ;;  %v983_v37 = vld [vmem:[%s1952_s5 + $0x48] sm:$0xff] }
   0xe   :  { %72 = vperm.xlu1 %1506, %v39_v14   ;;  %69 = vperm.xlu0 %1505, %v38_v15  }
  0x12   :  { %78 = vperm.xlu1 %1506, %v41_v16   ;;  %75 = vperm.xlu0 %1505, %v40_v17  }
  0x16   :  { %84 = vperm.xlu1 %1506, %v43_v18   ;;  %81 = vperm.xlu0 %1505, %v42_v19  }
  0x1a   :  { %90 = vperm.xlu1 %1506, %v45_v20   ;;  %87 = vperm.xlu0 %1505, %v44_v21  }
  0x1e   :  { %96 = vperm.xlu1 %1506, %v47_v22   ;;  %93 = vperm.xlu0 %1505, %v46_v23   ;;  %v1517_v23 = vmov 0.0|0.0  }
  0x1f   :  { %1453 = vmatprep.subr.bf16.mxu1 %v1517_v23 }
  0x81   :  { %v58_v35 = vpop.permute.xlu1 %57  ;;  %v52_v36 = vpop.permute.xlu0 %51 }
  0x82   :  { %vm98_vm1 = vcmp.eq.s32.totalorder %v52_v36, %v1648_v34  ;;  %vm100_vm2 = vcmp.eq.s32.totalorder %v58_v35, %v1648_v34  ;;  %v982_v36 = vld [vmem:[%s1952_s5 + $0x40] sm:$0xff] }
  0x83   :  { %v1213_v39 = vsel %vm98_vm1, 1.0, %v1516_v5  ;;  %v1215_v43 = vsel %vm100_vm2, 1.0, %v1516_v5  ;;  %vm352_vm2 = vcmask 130048   ;;  %v1466_v38 = vpack.c.bf16 %v983_v37, %v982_v36 }
  0x84   :  { %1343 = vmatprep.mubr.msk.f32.mxu0 %vm150_vm0, %v1213_v39  ;;  %v984_v39 = vld [vmem:[%s1952_s5 + $0x50] sm:$0xff] }
  0x85   :  { %v61_v40 = vpop.permute.xlu1 %60  ;;  %v55_v41 = vpop.permute.xlu0 %54 }
  0x86   :  { %vm101_vm3 = vcmp.eq.s32.totalorder %v61_v40, %v1648_v34  ;;  %vm99_vm4 = vcmp.eq.s32.totalorder %v55_v41, %v1648_v34  ;;  %v985_v40 = vld [vmem:[%s1952_s5 + $0x58] sm:$0xff] }
  0x87   :  { %v1214_v44 = vsel %vm99_vm4, 1.0, %v1516_v5  ;;  %v1216_v45 = vsel %vm101_vm3, 1.0, %v1516_v5  ;;  %v1469_v41 = vpack.c.bf16 %v985_v40, %v984_v39  ;;  %vm796_vm3 = vcmask 1045504  }
  0x88   :  { %1344 = vmatmul.mubr.msk.f32.vlgmr.msra.gmra.mrb[0].mxu0 %vm150_vm0, %v1214_v44  ;;  %vm739_vm4 = vcmask 1046528  }
  0x89   :  { %v67_v46 = vpop.permute.xlu1 %66  ;;  %v64_v47 = vpop.permute.xlu0 %63  ;;  %1346 = vmatprep.mubr.msk.f32.mxu0 %vm150_vm0, %v1215_v43  ;;  %1452 = vmatpush1.bf16.msra.mxu0 %v1451_v42  ;;  %v986_v42 = vld [vmem:[%s1952_s5 + $0x60] sm:$0xff]  ;;  %v987_v43 = vld [vmem:[%s1952_s5 + $0x68] sm:$0xff] }
  0x8a   :  { %vm102_vm5 = vcmp.eq.s32.totalorder %v64_v47, %v1648_v34  ;;  %vm103_vm6 = vcmp.eq.s32.totalorder %v67_v46, %v1648_v34  ;;  %v1472_v44 = vpack.c.bf16 %v987_v43, %v986_v42  ;;  %v989_v46 = vld [vmem:[%s1952_s5 + $0x78] sm:$0xff] }
  0x8b   :  { %v1217_v48 = vsel %vm102_vm5, 1.0, %v1516_v5  ;;  %v1218_v51 = vsel %vm103_vm6, 1.0, %v1516_v5  ;;  %vm853_vm5 = vcmask 1044480   ;;  %vm1005_vm6 = vcmask 1041409  }
  0x8c   :  { %1347 = vmatmul.mubr.msk.f32.gmra.mrb[2].mxu0 %vm150_vm0, %v1216_v45  ;;  %v988_v45 = vld [vmem:[%s1952_s5 + $0x70] sm:$0xff] }
  0x8d   :  { %v73_v49 = vpop.permute.xlu1 %72  ;;  %1349 = vmatprep.mubr.msk.f32.mxu0 %vm150_vm0, %v1217_v48  ;;  %v70_v50 = vpop.permute.xlu0 %69  ;;  %v1475_v47 = vpack.c.bf16 %v989_v46, %v988_v45 }
  0x8e   :  { %vm104_vm7 = vcmp.eq.s32.totalorder %v70_v50, %v1648_v34  ;;  %vm105_vm8 = vcmp.eq.s32.totalorder %v73_v49, %v1648_v34 }
  0x8f   :  { %v1219_v52 = vsel %vm104_vm7, 1.0, %v1516_v5  ;;  %v1220_v55 = vsel %vm105_vm8, 1.0, %v1516_v5  ;;  %vm1007_vm7 = vcmask 1042434   ;;  %vm1009_vm8 = vcmask 1043459  }
  0x90   :  { %1350 = vmatmul.mubr.msk.f32.gmra.mrb[4].mxu0 %vm150_vm0, %v1218_v51 }
  0x91   :  { %v79_v53 = vpop.permute.xlu1 %78  ;;  %1352 = vmatprep.mubr.msk.f32.mxu0 %vm150_vm0, %v1219_v52  ;;  %v76_v54 = vpop.permute.xlu0 %75 }
  0x92   :  { %vm106_vm9 = vcmp.eq.s32.totalorder %v76_v54, %v1648_v34  ;;  %vm107_vm10 = vcmp.eq.s32.totalorder %v79_v53, %v1648_v34 }
  0x93   :  { %v1221_v56 = vsel %vm106_vm9, 1.0, %v1516_v5  ;;  %v1222_v59 = vsel %vm107_vm10, 1.0, %v1516_v5  ;;  %vm1011_vm9 = vcmask 1044484   ;;  %vm1013_vm10 = vcmask 1045509  }
  0x94   :  { %1353 = vmatmul.mubr.msk.f32.gmra.mrb[6].mxu0 %vm150_vm0, %v1220_v55 }
  0x95   :  { %v85_v57 = vpop.permute.xlu1 %84  ;;  %1355 = vmatprep.mubr.msk.f32.mxu0 %vm150_vm0, %v1221_v56  ;;  %v82_v58 = vpop.permute.xlu0 %81 }
  0x96   :  { %vm108_vm11 = vcmp.eq.s32.totalorder %v82_v58, %v1648_v34  ;;  %vm109_vm12 = vcmp.eq.s32.totalorder %v85_v57, %v1648_v34 }
  0x97   :  { %v1223_v60 = vsel %vm108_vm11, 1.0, %v1516_v5  ;;  %v1224_v63 = vsel %vm109_vm12, 1.0, %v1516_v5  ;;  %vm1015_vm11 = vcmask 1046534   ;;  %vm1017_vm12 = vcmask 1047559  }
  0x98   :  { %1356 = vmatmul.mubr.msk.f32.gmra.mrb[8].mxu0 %vm150_vm0, %v1222_v59 }
  0x99   :  { %v91_v61 = vpop.permute.xlu1 %90  ;;  %1358 = vmatprep.mubr.msk.f32.mxu0 %vm150_vm0, %v1223_v60  ;;  %v88_v62 = vpop.permute.xlu0 %87 }
  0x9a   :  { %vm110_vm13 = vcmp.eq.s32.totalorder %v88_v62, %v1648_v34  ;;  %vm111_vm14 = vcmp.eq.s32.totalorder %v91_v61, %v1648_v34 }
  0x9b   :  { %v1225_v0 = vsel %vm110_vm13, 1.0, %v1516_v5  ;;  %v1226_v3 = vsel %vm111_vm14, 1.0, %v1516_v5  ;;  %vm1194_vm13 = vcmask 15360  }
  0x9c   :  { %1359 = vmatmul.mubr.msk.f32.gmra.mrb[10].mxu0 %vm150_vm0, %v1224_v63 }
  0x9d   :  { %v97_v1 = vpop.permute.xlu1 %96  ;;  %1361 = vmatprep.mubr.msk.f32.mxu0 %vm150_vm0, %v1225_v0  ;;  %v94_v2 = vpop.permute.xlu0 %93 }
  0x9e   :  { %vm112_vm15 = vcmp.eq.s32.totalorder %v94_v2, %v1648_v34  ;;  %vm113_vm1 = vcmp.eq.s32.totalorder %v97_v1, %v1648_v34  ;;  %v981_v34 = vld [vmem:[%s1952_s5 + $0x38] sm:$0xff] }
  0x9f   :  { %v1227_v4 = vsel %vm112_vm15, 1.0, %v1516_v5  ;;  %v1228_v6 = vsel %vm113_vm1, 1.0, %v1516_v5  ;;  %v1463_v35 = vpack.c.bf16 %v981_v34, %v980_v33 }
  0xa0   :  { %1362 = vmatmul.mubr.msk.f32.gmra.mrb[12].mxu0 %vm150_vm0, %v1226_v3 }
  0xa1   :  { %1364 = vmatprep.mubr.msk.f32.mxu0 %vm150_vm0, %v1227_v4 }
  0xa4   :  { %1365 = vmatmul.mubr.msk.f32.gmra.mrb[14].mxu0 %vm150_vm0, %v1228_v6  ;;  %vm1518_vm0 = vmmov 0  }
  0xa5   :  { %618 = vmatprep.mubr.f32.mxu0 %v1516_v5 }
 0x15b   :  { %v1345_v7 = vpop.f32.mrb[0].mxu0 }
 0x15c   :  { %v265_v8 = vpop.f32.mrb[1].mxu0 }
 0x15d   :  { %1245 = vmatmul.mubr.msk.f32.vlgmr.msra.gmra.mrb[0].mxu1 %vm352_vm2, %v265_v8  ;;  %1261 = vmatmul.mubr.msk.f32.vlgmr.msra.gmra.mrb[16].mxu0 %vm352_vm2, %v265_v8  ;;  %v1832_v8 = vld [vmem:[%s1953_s3] ss:$0 sm:$0xff] }
 0x15e   :  { %471 = vmatprep.mubr.f32.mxu1 %v1516_v5  ;;  %624 = vmatprep.mubr.f32.mxu0 %v1516_v5 }
 0x15f   :  { %v1348_v9 = vpop.f32.mrb[2].mxu0  ;;  %1455 = vmatpush3.bf16.msra.mxu1 %v1454_v26 }
 0x160   :  { %v275_v10 = vpop.f32.mrb[3].mxu0  ;;  %1456 = vmatprep.subr.bf16.mxu1 %v1517_v23 }
 0x161   :  { %1246 = vmatmul.mubr.msk.f32.gmra.mrb[2].mxu1 %vm352_vm2, %v1345_v7  ;;  %1262 = vmatmul.mubr.msk.f32.gmra.mrb[18].mxu0 %vm352_vm2, %v1345_v7 }
 0x162   :  { %476 = vmatprep.mubr.f32.mxu1 %v1516_v5  ;;  %630 = vmatprep.mubr.f32.mxu0 %v1516_v5 }
 0x163   :  { %v1351_v11 = vpop.f32.mrb[4].mxu0  ;;  %1458 = vmatpush3.bf16.msra.mxu1 %v1457_v29 }
 0x164   :  { %v285_v12 = vpop.f32.mrb[5].mxu0  ;;  %1459 = vmatprep.subr.bf16.mxu1 %v1517_v23 }
 0x165   :  { %1247 = vmatmul.mubr.msk.f32.gmra.mrb[4].mxu1 %vm352_vm2, %v275_v10  ;;  %1263 = vmatmul.mubr.msk.f32.gmra.mrb[20].mxu0 %vm352_vm2, %v275_v10 }
 0x166   :  { %482 = vmatprep.mubr.f32.mxu1 %v1516_v5  ;;  %636 = vmatprep.mubr.f32.mxu0 %v1516_v5 }
 0x167   :  { %v1354_v13 = vpop.f32.mrb[6].mxu0  ;;  %1461 = vmatpush3.bf16.msra.mxu1 %v1460_v32 }
 0x168   :  { %v295_v14 = vpop.f32.mrb[7].mxu0  ;;  %1462 = vmatprep.subr.bf16.mxu1 %v1517_v23 }
 0x169   :  { %1248 = vmatmul.mubr.msk.f32.gmra.mrb[6].mxu1 %vm352_vm2, %v1348_v9  ;;  %1264 = vmatmul.mubr.msk.f32.gmra.mrb[22].mxu0 %vm352_vm2, %v1348_v9 }
 0x16a   :  { %487 = vmatprep.mubr.f32.mxu1 %v1516_v5  ;;  %642 = vmatprep.mubr.f32.mxu0 %v1516_v5 }
 0x16b   :  { %v1357_v15 = vpop.f32.mrb[8].mxu0  ;;  %1464 = vmatpush3.bf16.msra.mxu1 %v1463_v35 }
 0x16c   :  { %v305_v16 = vpop.f32.mrb[9].mxu0  ;;  %1465 = vmatprep.subr.bf16.mxu1 %v1517_v23 }
 0x16d   :  { %1249 = vmatmul.mubr.msk.f32.gmra.mrb[8].mxu1 %vm352_vm2, %v285_v12  ;;  %1265 = vmatmul.mubr.msk.f32.gmra.mrb[24].mxu0 %vm352_vm2, %v285_v12 }
 0x16e   :  { %493 = vmatprep.mubr.f32.mxu1 %v1516_v5  ;;  %648 = vmatprep.mubr.f32.mxu0 %v1516_v5 }
 0x16f   :  { %v1360_v17 = vpop.f32.mrb[10].mxu0  ;;  %1467 = vmatpush3.bf16.msra.mxu1 %v1466_v38 }
 0x170   :  { %v315_v18 = vpop.f32.mrb[11].mxu0  ;;  %1468 = vmatprep.subr.bf16.mxu1 %v1517_v23 }
 0x171   :  { %1250 = vmatmul.mubr.msk.f32.gmra.mrb[10].mxu1 %vm352_vm2, %v1351_v11  ;;  %1266 = vmatmul.mubr.msk.f32.gmra.mrb[26].mxu0 %vm352_vm2, %v1351_v11 }
 0x172   :  { %498 = vmatprep.mubr.f32.mxu1 %v1516_v5  ;;  %654 = vmatprep.mubr.f32.mxu0 %v1516_v5 }
 0x173   :  { %v1363_v19 = vpop.f32.mrb[12].mxu0  ;;  %1470 = vmatpush3.bf16.msra.mxu1 %v1469_v41 }
 0x174   :  { %v325_v20 = vpop.f32.mrb[13].mxu0  ;;  %1471 = vmatprep.subr.bf16.mxu1 %v1517_v23 }
 0x175   :  { %1251 = vmatmul.mubr.msk.f32.gmra.mrb[12].mxu1 %vm352_vm2, %v295_v14  ;;  %1267 = vmatmul.mubr.msk.f32.gmra.mrb[28].mxu0 %vm352_vm2, %v295_v14 }
 0x176   :  { %504 = vmatprep.mubr.f32.mxu1 %v1516_v5  ;;  %660 = vmatprep.mubr.f32.mxu0 %v1516_v5 }
 0x177   :  { %v1366_v21 = vpop.f32.mrb[14].mxu0  ;;  %1473 = vmatpush3.bf16.msra.mxu1 %v1472_v44 }
 0x178   :  { %v335_v22 = vpop.f32.mrb[15].mxu0  ;;  %1474 = vmatprep.subr.bf16.mxu1 %v1517_v23 }
 0x179   :  { %1252 = vmatmul.mubr.msk.f32.gmra.mrb[14].mxu1 %vm352_vm2, %v1354_v13  ;;  %1268 = vmatmul.mubr.msk.f32.gmra.mrb[30].mxu0 %vm352_vm2, %v1354_v13 }
 0x17a   :  { %509 = vmatprep.mubr.f32.mxu1 %v1516_v5  ;;  %666 = vmatprep.mubr.f32.mxu0 %v1516_v5 }
 0x17b   :  { %1476 = vmatpush3.bf16.msra.mxu1 %v1475_v47 }
 0x17c   :  { %1477 = vmatprep.subr.bf16.mxu1 %v1517_v23 }
 0x17d   :  { %1253 = vmatmul.mubr.msk.f32.gmra.mrb[16].mxu1 %vm352_vm2, %v305_v16  ;;  %1269 = vmatmul.mubr.msk.f32.gmra.mrb[32].mxu0 %vm352_vm2, %v305_v16 }
 0x17e   :  { %515 = vmatprep.mubr.f32.mxu1 %v1516_v5  ;;  %672 = vmatprep.mubr.f32.mxu0 %v1516_v5 }
 0x181   :  { %1254 = vmatmul.mubr.msk.f32.gmra.mrb[18].mxu1 %vm352_vm2, %v1357_v15  ;;  %1270 = vmatmul.mubr.msk.f32.gmra.mrb[34].mxu0 %vm352_vm2, %v1357_v15 }
 0x182   :  { %520 = vmatprep.mubr.f32.mxu1 %v1516_v5  ;;  %678 = vmatprep.mubr.f32.mxu0 %v1516_v5 }
 0x185   :  { %1255 = vmatmul.mubr.msk.f32.gmra.mrb[20].mxu1 %vm352_vm2, %v315_v18  ;;  %1271 = vmatmul.mubr.msk.f32.gmra.mrb[36].mxu0 %vm352_vm2, %v315_v18 }
 0x186   :  { %526 = vmatprep.mubr.f32.mxu1 %v1516_v5  ;;  %684 = vmatprep.mubr.f32.mxu0 %v1516_v5 }
 0x189   :  { %1256 = vmatmul.mubr.msk.f32.gmra.mrb[22].mxu1 %vm352_vm2, %v1360_v17  ;;  %1272 = vmatmul.mubr.msk.f32.gmra.mrb[38].mxu0 %vm352_vm2, %v1360_v17 }
 0x18a   :  { %531 = vmatprep.mubr.f32.mxu1 %v1516_v5  ;;  %690 = vmatprep.mubr.f32.mxu0 %v1516_v5 }
 0x18d   :  { %1257 = vmatmul.mubr.msk.f32.gmra.mrb[24].mxu1 %vm352_vm2, %v325_v20  ;;  %1273 = vmatmul.mubr.msk.f32.gmra.mrb[40].mxu0 %vm352_vm2, %v325_v20 }
 0x18e   :  { %537 = vmatprep.mubr.f32.mxu1 %v1516_v5  ;;  %696 = vmatprep.mubr.f32.mxu0 %v1516_v5 }
 0x191   :  { %1258 = vmatmul.mubr.msk.f32.gmra.mrb[26].mxu1 %vm352_vm2, %v1363_v19  ;;  %1274 = vmatmul.mubr.msk.f32.gmra.mrb[42].mxu0 %vm352_vm2, %v1363_v19 }
 0x192   :  { %542 = vmatprep.mubr.f32.mxu1 %v1516_v5  ;;  %702 = vmatprep.mubr.f32.mxu0 %v1516_v5 }
 0x195   :  { %1259 = vmatmul.mubr.msk.f32.gmra.mrb[28].mxu1 %vm352_vm2, %v335_v22  ;;  %1275 = vmatmul.mubr.msk.f32.gmra.mrb[44].mxu0 %vm352_vm2, %v335_v22  ;;  %v1839_v22 = vld [vmem:[%s1954_s4] sm:$0xff] }
 0x196   :  { %548 = vmatprep.mubr.f32.mxu1 %v1516_v5  ;;  %708 = vmatprep.mubr.f32.mxu0 %v1516_v5 }
 0x199   :  { %1260 = vmatmul.mubr.msk.f32.gmra.mrb[30].mxu1 %vm352_vm2, %v1366_v21  ;;  %1276 = vmatmul.mubr.msk.f32.gmra.mrb[46].mxu0 %vm352_vm2, %v1366_v21 }
 0x19a   :  { %1399 = vmatprep.mubr.msk.f32.mxu1 %vm1518_vm0, %v1516_v5 }
 0x230   :  { %v467_v48 = vpop.f32.mrb[0].mxu1  ;;  %v620_v49 = vpop.f32.mrb[16].mxu0 }
 0x231   :  { %v469_v50 = vpop.f32.mrb[1].mxu1  ;;  %v622_v51 = vpop.f32.mrb[17].mxu0  ;;  %v797_v54 = vrot.slane %v620_v49, 2 }
 0x232   :  { %v740_v58 = vrot.slane %v469_v50, 1  ;;  %v854_v59 = vrot.slane %v622_v51, 3 }
 0x234   :  { %v473_v52 = vpop.f32.mrb[2].mxu1  ;;  %v626_v53 = vpop.f32.mrb[18].mxu0 }
 0x235   :  { %v798_v55 = vrot.slane %v626_v53, 2  ;;  %v474_v56 = vpop.f32.mrb[3].mxu1  ;;  %v628_v57 = vpop.f32.mrb[19].mxu0 }
 0x236   :  { %v741_v60 = vrot.slane %v474_v56, 1  ;;  %v855_v61 = vrot.slane %v628_v57, 3 }
 0x237   :  { %v799_v62 = vsel %vm796_vm3, %v797_v54, %v798_v55 }
 0x238   :  { %v742_v63 = vsel %vm739_vm4, %v740_v58, %v741_v60  ;;  %v856_v0 = vsel %vm853_vm5, %v854_v59, %v855_v61  ;;  %v478_v1 = vpop.f32.mrb[4].mxu1  ;;  %v632_v2 = vpop.f32.mrb[20].mxu0 }
 0x239   :  { %v772_v3 = vadd.f32 %v742_v63, %v467_v48  ;;  %v480_v4 = vpop.f32.mrb[5].mxu1  ;;  %v634_v6 = vpop.f32.mrb[21].mxu0  ;;  %v800_v12 = vrot.slane %v632_v2, 2 }
 0x23a   :  { %v743_v16 = vrot.slane %v480_v4, 1  ;;  %v857_v17 = vrot.slane %v634_v6, 3 }
 0x23b   :  { %v829_v7 = vadd.f32 %v799_v62, %v772_v3 }
 0x23c   :  { %v484_v9 = vpop.f32.mrb[6].mxu1  ;;  %v638_v10 = vpop.f32.mrb[22].mxu0 }
 0x23d   :  { %v886_v11 = vadd.f32 %v856_v0, %v829_v7  ;;  %v801_v13 = vrot.slane %v638_v10, 2  ;;  %v485_v14 = vpop.f32.mrb[7].mxu1  ;;  %v640_v15 = vpop.f32.mrb[23].mxu0 }
 0x23e   :  { %v744_v18 = vrot.slane %v485_v14, 1  ;;  %v858_v19 = vrot.slane %v640_v15, 3 }
 0x23f   :  { %v901_v20 = vadd.f32 %v1832_v8, %v886_v11  ;;  %v802_v21 = vsel %vm796_vm3, %v800_v12, %v801_v13 }
 0x240   :  { %v745_v24 = vsel %vm739_vm4, %v743_v16, %v744_v18  ;;  %v859_v25 = vsel %vm853_vm5, %v857_v17, %v858_v19  ;;  %v489_v26 = vpop.f32.mrb[8].mxu1  ;;  %v644_v27 = vpop.f32.mrb[24].mxu0 }
 0x241   :  { %v909_v28 = vmax.f32 %v901_v20, 0.0  ;;  %v773_v29 = vadd.f32 %v745_v24, %v478_v1  ;;  %v491_v30 = vpop.f32.mrb[9].mxu1  ;;  %v646_v31 = vpop.f32.mrb[25].mxu0  ;;  %v803_v38 = vrot.slane %v644_v27, 2 }
 0x242   :  { %v746_v42 = vrot.slane %v491_v30, 1  ;;  %v860_v43 = vrot.slane %v646_v31, 3 }
 0x243   :  { %v918_v32 = vmul.f32 %v1839_v22, %v909_v28  ;;  %v830_v33 = vadd.f32 %v802_v21, %v773_v29 }
 0x244   :  { %v495_v34 = vpop.f32.mrb[10].mxu1  ;;  %v650_v35 = vpop.f32.mrb[26].mxu0 }
 0x245   :  { %v926_v36 = vrot.slane %v918_v32, 4  ;;  %v887_v37 = vadd.f32 %v859_v25, %v830_v33  ;;  %v804_v39 = vrot.slane %v650_v35, 2  ;;  %v496_v40 = vpop.f32.mrb[11].mxu1  ;;  %v652_v41 = vpop.f32.mrb[27].mxu0 }
 0x246   :  { %v747_v44 = vrot.slane %v496_v40, 1  ;;  %v861_v45 = vrot.slane %v652_v41, 3 }
 0x247   :  { %v902_v46 = vadd.f32 %v1832_v8, %v887_v37  ;;  %v805_v47 = vsel %vm796_vm3, %v803_v38, %v804_v39  ;;  %v927_v48 = vmax.f32 %v918_v32, %v926_v36 }
 0x248   :  { %v748_v49 = vsel %vm739_vm4, %v746_v42, %v747_v44  ;;  %v862_v50 = vsel %vm853_vm5, %v860_v43, %v861_v45  ;;  %v500_v51 = vpop.f32.mrb[12].mxu1  ;;  %v656_v52 = vpop.f32.mrb[28].mxu0 }
 0x249   :  { %v910_v53 = vmax.f32 %v902_v46, 0.0  ;;  %v774_v54 = vadd.f32 %v748_v49, %v489_v26  ;;  %v502_v55 = vpop.f32.mrb[13].mxu1  ;;  %v658_v56 = vpop.f32.mrb[29].mxu0  ;;  %v928_v59 = vrot.slane %v927_v48, 2  ;;  %v806_v0 = vrot.slane %v656_v52, 2 }
 0x24a   :  { %v749_v4 = vrot.slane %v502_v55, 1  ;;  %v863_v6 = vrot.slane %v658_v56, 3 }
 0x24b   :  { %v919_v57 = vmul.f32 %v1839_v22, %v910_v53  ;;  %v831_v58 = vadd.f32 %v805_v47, %v774_v54  ;;  %v929_v13 = vmax.f32 %v927_v48, %v928_v59 }
 0x24c   :  { %v506_v60 = vpop.f32.mrb[14].mxu1  ;;  %v662_v61 = vpop.f32.mrb[30].mxu0 }
 0x24d   :  { %v932_v62 = vrot.slane %v919_v57, 4  ;;  %v888_v63 = vadd.f32 %v862_v50, %v831_v58  ;;  %v807_v1 = vrot.slane %v662_v61, 2  ;;  %v507_v2 = vpop.f32.mrb[15].mxu1  ;;  %v664_v3 = vpop.f32.mrb[31].mxu0  ;;  %v930_v28 = vrot.slane %v929_v13, 1 }
 0x24e   :  { %v750_v7 = vrot.slane %v507_v2, 1  ;;  %v864_v9 = vrot.slane %v664_v3, 3 }
 0x24f   :  { %v933_v10 = vmax.f32 %v919_v57, %v932_v62  ;;  %v903_v11 = vadd.f32 %v1832_v8, %v888_v63  ;;  %v808_v12 = vsel %vm796_vm3, %v806_v0, %v807_v1  ;;  %v931_v46 = vmax.f32 %v929_v13, %v930_v28 }
 0x250   :  { %v751_v14 = vsel %vm739_vm4, %v749_v4, %v750_v7  ;;  %v865_v15 = vsel %vm853_vm5, %v863_v6, %v864_v9  ;;  %v511_v16 = vpop.f32.mrb[16].mxu1  ;;  %v668_v17 = vpop.f32.mrb[32].mxu0 }
 0x251   :  { %v934_v18 = vrot.slane %v933_v10, 2  ;;  %v911_v19 = vmax.f32 %v903_v11, 0.0  ;;  %v775_v20 = vadd.f32 %v751_v14, %v500_v51  ;;  %v513_v21 = vpop.f32.mrb[17].mxu1  ;;  %v670_v24 = vpop.f32.mrb[33].mxu0  ;;  %v809_v29 = vrot.slane %v668_v17, 2 }
 0x252   :  { %v752_v38 = vrot.slane %v513_v21, 1  ;;  %v866_v39 = vrot.slane %v670_v24, 3 }
 0x253   :  { %v935_v25 = vmax.f32 %v933_v10, %v934_v18  ;;  %v920_v26 = vmul.f32 %v1839_v22, %v911_v19  ;;  %v832_v27 = vadd.f32 %v808_v12, %v775_v20 }
 0x254   :  { %v517_v30 = vpop.f32.mrb[18].mxu1  ;;  %v674_v31 = vpop.f32.mrb[34].mxu0 }
 0x255   :  { %v936_v32 = vrot.slane %v935_v25, 1  ;;  %v938_v33 = vrot.slane %v920_v26, 4  ;;  %v889_v34 = vadd.f32 %v865_v15, %v832_v27  ;;  %v810_v35 = vrot.slane %v674_v31, 2  ;;  %v518_v36 = vpop.f32.mrb[19].mxu1  ;;  %v676_v37 = vpop.f32.mrb[35].mxu0 }
 0x256   :  { %v753_v40 = vrot.slane %v518_v36, 1  ;;  %v867_v41 = vrot.slane %v676_v37, 3 }
 0x257   :  { %v937_v42 = vmax.f32 %v935_v25, %v936_v32  ;;  %v939_v43 = vmax.f32 %v920_v26, %v938_v33  ;;  %v904_v44 = vadd.f32 %v1832_v8, %v889_v34  ;;  %v811_v45 = vsel %vm796_vm3, %v809_v29, %v810_v35 }
 0x258   :  { %v754_v47 = vsel %vm739_vm4, %v752_v38, %v753_v40  ;;  %v868_v48 = vsel %vm853_vm5, %v866_v39, %v867_v41  ;;  %v522_v49 = vpop.f32.mrb[20].mxu1  ;;  %v680_v50 = vpop.f32.mrb[36].mxu0 }
 0x259   :  { %v940_v51 = vrot.slane %v939_v43, 2  ;;  %v912_v52 = vmax.f32 %v904_v44, 0.0  ;;  %v776_v53 = vadd.f32 %v754_v47, %v511_v16  ;;  %v524_v54 = vpop.f32.mrb[21].mxu1  ;;  %v682_v55 = vpop.f32.mrb[37].mxu0  ;;  %v1006_v56 = vsel %vm1005_vm6, %v937_v42, %v931_v46 }
 0x25a   :  { %v812_v60 = vrot.slane %v680_v50, 2  ;;  %v755_v6 = vrot.slane %v524_v54, 1  ;;  %v869_v7 = vrot.slane %v682_v55, 3 }
 0x25b   :  { %v941_v57 = vmax.f32 %v939_v43, %v940_v51  ;;  %v921_v58 = vmul.f32 %v1839_v22, %v912_v52  ;;  %v833_v59 = vadd.f32 %v811_v45, %v776_v53 }
 0x25c   :  { %v528_v61 = vpop.f32.mrb[22].mxu1  ;;  %v686_v62 = vpop.f32.mrb[38].mxu0 }
 0x25d   :  { %v942_v63 = vrot.slane %v941_v57, 1  ;;  %v944_v0 = vrot.slane %v921_v58, 4  ;;  %v890_v1 = vadd.f32 %v868_v48, %v833_v59  ;;  %v813_v2 = vrot.slane %v686_v62, 2  ;;  %v529_v3 = vpop.f32.mrb[23].mxu1  ;;  %v688_v4 = vpop.f32.mrb[39].mxu0 }
 0x25e   :  { %v756_v9 = vrot.slane %v529_v3, 1  ;;  %v870_v10 = vrot.slane %v688_v4, 3 }
 0x25f   :  { %v943_v11 = vmax.f32 %v941_v57, %v942_v63  ;;  %v945_v12 = vmax.f32 %v921_v58, %v944_v0  ;;  %v905_v13 = vadd.f32 %v1832_v8, %v890_v1  ;;  %v814_v14 = vsel %vm796_vm3, %v812_v60, %v813_v2 }
 0x260   :  { %v757_v15 = vsel %vm739_vm4, %v755_v6, %v756_v9  ;;  %v871_v16 = vsel %vm853_vm5, %v869_v7, %v870_v10  ;;  %v533_v17 = vpop.f32.mrb[24].mxu1  ;;  %v692_v18 = vpop.f32.mrb[40].mxu0 }
 0x261   :  { %v946_v19 = vrot.slane %v945_v12, 2  ;;  %v913_v20 = vmax.f32 %v905_v13, 0.0  ;;  %v777_v21 = vadd.f32 %v757_v15, %v522_v49  ;;  %v535_v24 = vpop.f32.mrb[25].mxu1  ;;  %v694_v25 = vpop.f32.mrb[41].mxu0  ;;  %v1008_v26 = vsel %vm1007_vm7, %v943_v11, %v1006_v56 }
 0x262   :  { %v815_v30 = vrot.slane %v692_v18, 2  ;;  %v758_v39 = vrot.slane %v535_v24, 1  ;;  %v872_v40 = vrot.slane %v694_v25, 3 }
 0x263   :  { %v947_v27 = vmax.f32 %v945_v12, %v946_v19  ;;  %v922_v28 = vmul.f32 %v1839_v22, %v913_v20  ;;  %v834_v29 = vadd.f32 %v814_v14, %v777_v21 }
 0x264   :  { %v539_v31 = vpop.f32.mrb[26].mxu1  ;;  %v698_v32 = vpop.f32.mrb[42].mxu0 }
 0x265   :  { %v948_v33 = vrot.slane %v947_v27, 1  ;;  %v950_v34 = vrot.slane %v922_v28, 4  ;;  %v891_v35 = vadd.f32 %v871_v16, %v834_v29  ;;  %v816_v36 = vrot.slane %v698_v32, 2  ;;  %v540_v37 = vpop.f32.mrb[27].mxu1  ;;  %v700_v38 = vpop.f32.mrb[43].mxu0 }
 0x266   :  { %v759_v41 = vrot.slane %v540_v37, 1  ;;  %v873_v42 = vrot.slane %v700_v38, 3 }
 0x267   :  { %v949_v43 = vmax.f32 %v947_v27, %v948_v33  ;;  %v951_v44 = vmax.f32 %v922_v28, %v950_v34  ;;  %v906_v45 = vadd.f32 %v1832_v8, %v891_v35  ;;  %v817_v46 = vsel %vm796_vm3, %v815_v30, %v816_v36 }
 0x268   :  { %v760_v47 = vsel %vm739_vm4, %v758_v39, %v759_v41  ;;  %v874_v48 = vsel %vm853_vm5, %v872_v40, %v873_v42  ;;  %v544_v49 = vpop.f32.mrb[28].mxu1  ;;  %v704_v50 = vpop.f32.mrb[44].mxu0 }
 0x269   :  { %v952_v51 = vrot.slane %v951_v44, 2  ;;  %v914_v52 = vmax.f32 %v906_v45, 0.0  ;;  %v778_v53 = vadd.f32 %v760_v47, %v533_v17  ;;  %v546_v54 = vpop.f32.mrb[29].mxu1  ;;  %v706_v55 = vpop.f32.mrb[45].mxu0  ;;  %v1010_v56 = vsel %vm1009_vm8, %v949_v43, %v1008_v26 }
 0x26a   :  { %v818_v60 = vrot.slane %v704_v50, 2  ;;  %v761_v6 = vrot.slane %v546_v54, 1  ;;  %v875_v7 = vrot.slane %v706_v55, 3  ;;  %v1105_v50 = vld [vmem:[%s1955_s7 + $0x20] sm:$0xff]  ;;  %v1108_v54 = vld [vmem:[%s1955_s7 + $0x38] sm:$0xff] }
 0x26b   :  { %v953_v57 = vmax.f32 %v951_v44, %v952_v51  ;;  %v923_v58 = vmul.f32 %v1839_v22, %v914_v52  ;;  %v835_v59 = vadd.f32 %v817_v46, %v778_v53  ;;  %v1106_v51 = vld [vmem:[%s1955_s7 + $0x28] sm:$0xff]  ;;  %v1107_v53 = vld [vmem:[%s1955_s7 + $0x30] sm:$0xff] }
 0x26c   :  { %v550_v61 = vpop.f32.mrb[30].mxu1  ;;  %v710_v62 = vpop.f32.mrb[46].mxu0  ;;  %v1484_v52 = vpack.c.bf16 %v1106_v51, %v1105_v50  ;;  %v1487_v55 = vpack.c.bf16 %v1108_v54, %v1107_v53 }
 0x26d   :  { %v954_v63 = vrot.slane %v953_v57, 1  ;;  %v956_v0 = vrot.slane %v923_v58, 4  ;;  %v892_v1 = vadd.f32 %v874_v48, %v835_v59  ;;  %v819_v2 = vrot.slane %v710_v62, 2  ;;  %v551_v3 = vpop.f32.mrb[31].mxu1  ;;  %v712_v4 = vpop.f32.mrb[47].mxu0  ;;  %v1103_v48 = vld [vmem:[%s1955_s7 + $0x10] sm:$0xff] }
 0x26e   :  { %v762_v9 = vrot.slane %v551_v3, 1  ;;  %v876_v10 = vrot.slane %v712_v4, 3  ;;  %v1111_v59 = vld [vmem:[%s1955_s7 + $0x50] sm:$0xff]  ;;  %v1113_v62 = vld [vmem:[%s1955_s7 + $0x60] sm:$0xff] }
 0x26f   :  { %v955_v11 = vmax.f32 %v953_v57, %v954_v63  ;;  %v957_v12 = vmax.f32 %v923_v58, %v956_v0  ;;  %v907_v13 = vadd.f32 %v1832_v8, %v892_v1  ;;  %v820_v14 = vsel %vm796_vm3, %v818_v60, %v819_v2  ;;  %v1110_v57 = vld [vmem:[%s1955_s7 + $0x48] sm:$0xff]  ;;  %v1112_v60 = vld [vmem:[%s1955_s7 + $0x58] sm:$0xff]  ;;  %v1115_v1 = vld [vmem:[%s1955_s7 + $0x70] sm:$0xff] }
 0x270   :  { %v763_v15 = vsel %vm739_vm4, %v761_v6, %v762_v9  ;;  %v877_v16 = vsel %vm853_vm5, %v875_v7, %v876_v10  ;;  %v1493_v61 = vpack.c.bf16 %v1112_v60, %v1111_v59  ;;  %v1114_v63 = vld [vmem:[%s1955_s7 + $0x68] sm:$0xff]  ;;  %v1116_v2 = vld [vmem:[%s1955_s7 + $0x78] sm:$0xff]  ;;  %v1278_v4 = vld [vmem:[%s1956_s6] ss:$0 sm:$0xff] }
 0x271   :  { %v958_v17 = vrot.slane %v957_v12, 2  ;;  %v915_v18 = vmax.f32 %v907_v13, 0.0  ;;  %v779_v19 = vadd.f32 %v763_v15, %v544_v49  ;;  %v1012_v20 = vsel %vm1011_vm9, %v955_v11, %v1010_v56  ;;  %v1109_v56 = vld [vmem:[%s1955_s7 + $0x40] sm:$0xff] }
 0x272   :  { %v1490_v58 = vpack.c.bf16 %v1110_v57, %v1109_v56  ;;  %v1496_v0 = vpack.c.bf16 %v1114_v63, %v1113_v62  ;;  %v1499_v3 = vpack.c.bf16 %v1116_v2, %v1115_v1 }
 0x273   :  { %v959_v21 = vmax.f32 %v957_v12, %v958_v17  ;;  %v924_v24 = vmul.f32 %v1839_v22, %v915_v18  ;;  %v836_v25 = vadd.f32 %v820_v14, %v779_v19  ;;  %v1280_v18 = vld [vmem:[%s1957_s8] ss:$0 sm:$0xff] }
 0x275   :  { %v960_v26 = vrot.slane %v959_v21, 1  ;;  %v962_v27 = vrot.slane %v924_v24, 4  ;;  %v893_v28 = vadd.f32 %v877_v16, %v836_v25 }
 0x277   :  { %v963_v29 = vmax.f32 %v924_v24, %v962_v27  ;;  %v908_v30 = vadd.f32 %v1832_v8, %v893_v28  ;;  %v961_v31 = vmax.f32 %v959_v21, %v960_v26  ;;  %v1101_v8 = vld [vmem:[%s1955_s7] sm:$0xff] }
 0x279   :  { %v964_v32 = vrot.slane %v963_v29, 2  ;;  %v916_v33 = vmax.f32 %v908_v30, 0.0  ;;  %v1014_v34 = vsel %vm1013_vm10, %v961_v31, %v1012_v20 }
 0x27b   :  { %v925_v35 = vmul.f32 %v1839_v22, %v916_v33  ;;  %v965_v36 = vmax.f32 %v963_v29, %v964_v32  ;;  %v1102_v22 = vld [vmem:[%s1955_s7 + $0x8] sm:$0xff] }
 0x27c   :  { %v1478_v47 = vpack.c.bf16 %v1102_v22, %v1101_v8 }
 0x27d   :  { %v968_v37 = vrot.slane %v925_v35, 4  ;;  %v966_v38 = vrot.slane %v965_v36, 1 }
 0x27f   :  { %v969_v39 = vmax.f32 %v925_v35, %v968_v37  ;;  %v967_v40 = vmax.f32 %v965_v36, %v966_v38 }
 0x281   :  { %v970_v41 = vrot.slane %v969_v39, 2  ;;  %v1016_v42 = vsel %vm1015_vm11, %v967_v40, %v1014_v34 }
 0x283   :  { %v971_v43 = vmax.f32 %v969_v39, %v970_v41 }
 0x285   :  { %v972_v44 = vrot.slane %v971_v43, 1 }
 0x287   :  { %v973_v45 = vmax.f32 %v971_v43, %v972_v44 }
 0x289   :  { %v1018_v46 = vsel %vm1017_vm12, %v973_v45, %v1016_v42 }
 0x28a   :  { %1400 = vmatmul.mubr.f32.vlgmr.msra.gmra.mrb[32].mxu1 %v1018_v46 }
 0x28b   :  { %1434 = vmatprep.mubr.msk.f32.mxu1 %vm1518_vm0, %v1516_v5  ;;  %1479 = vmatpush3.bf16.msra.mxu1 %v1478_v47  ;;  %v1104_v5 = vld [vmem:[%s1955_s7 + $0x18] sm:$0xff] }
 0x28c   :  { %1480 = vmatprep.subr.bf16.mxu1 %v1517_v23  ;;  %v1481_v49 = vpack.c.bf16 %v1104_v5, %v1103_v48 }
 0x28f   :  { %1482 = vmatpush3.bf16.msra.mxu1 %v1481_v49 }
 0x290   :  { %1483 = vmatprep.subr.bf16.mxu1 %v1517_v23 }
 0x293   :  { %1485 = vmatpush3.bf16.msra.mxu1 %v1484_v52 }
 0x294   :  { %1486 = vmatprep.subr.bf16.mxu1 %v1517_v23 }
 0x297   :  { %1488 = vmatpush3.bf16.msra.mxu1 %v1487_v55 }
 0x298   :  { %1489 = vmatprep.subr.bf16.mxu1 %v1517_v23 }
 0x29b   :  { %1491 = vmatpush3.bf16.msra.mxu1 %v1490_v58 }
 0x29c   :  { %1492 = vmatprep.subr.bf16.mxu1 %v1517_v23 }
 0x29f   :  { %1494 = vmatpush3.bf16.msra.mxu1 %v1493_v61 }
 0x2a0   :  { %1495 = vmatprep.subr.bf16.mxu1 %v1517_v23 }
 0x2a3   :  { %1497 = vmatpush3.bf16.msra.mxu1 %v1496_v0 }
 0x2a4   :  { %1498 = vmatprep.subr.bf16.mxu1 %v1517_v23 }
 0x2a7   :  { %1500 = vmatpush3.bf16.msra.mxu1 %v1499_v3 }
 0x35d   :  { %v1086_v6 = vpop.f32.mrb[32].mxu1 }
 0x35e   :  { %v1087_v7 = vadd.f32 %v1278_v4, %v1086_v6  ;;  %v1401_v9 = vpop.f32.mrb[33].mxu1 }
 0x360   :  { %v1279_v10 = vmul.f32 -1.442695, %v1087_v7  ;;  %v1096_v13 = vmax.f32 %v1087_v7, 0.0 }
 0x362   :  { %1507 = vpow2.f32 %v1279_v10 }
 0x36c   :  { %v1508_v23 = vpop.eup %1507 }
 0x36d   :  { %v1093_v11 = vadd.f32 1.0, %v1508_v23 }
 0x36f   :  { %1509 = vrcp.f32 %v1093_v11 }
 0x379   :  { %v1510_v12 = vpop.eup %1509 }
 0x37a   :  { %v1098_v14 = vsub.f32 1.0, %v1510_v12  ;;  %v1097_v15 = vmul.f32 %v1510_v12, %v1096_v13 }
 0x37c   :  { %v1099_v16 = vmul.f32 %v1098_v14, %v1018_v46 }
 0x37e   :  { %v1100_v17 = vadd.f32 %v1099_v16, %v1097_v15 }
 0x380   :  { %1435 = vmatmul.mubr.f32.vlgmr.msra.gmra.mrb[34].mxu1 %v1100_v17 }
 0x453   :  { %v1190_v19 = vpop.f32.mrb[34].mxu1 }
 0x454   :  { %v1191_v20 = vadd.f32 %v1280_v18, %v1190_v19  ;;  %v1436_v21 = vpop.f32.mrb[35].mxu1 }
 0x456   :  { %v1195_v24 = vsel %vm1194_vm13, %v1191_v20, -inf }
 0x457   :  { %1196 = vmax.xlane.f32.xlu0 %v1195_v24 }
 0x4e4   :  { %v1197_v25 = vpop.xlane.xlu0 %1196 }
 0x4e5   :  { %v1198_v26 = vsub.f32 %v1191_v20, %v1197_v25 }
 0x4e7   :  { %v1199_v27 = vmul.f32 1.442695, %v1198_v26 }
 0x4e9   :  { %1511 = vpow2.f32 %v1199_v27 }
 0x4f3   :  { %v1512_v28 = vpop.eup %1511 }
 0x4f4   :  { %v1201_v29 = vsel %vm1194_vm13, %v1512_v28, 0.0 }
 0x4f5   :  { %1202 = vadd.xlane.f32.xlu1 %v1201_v29 }
 0x582   :  { %v1203_v30 = vpop.xlane.xlu1 %1202 }
 0x583   :  { %1513 = vlog2.f32 %v1203_v30 }
 0x58d   :  { %v1514_v31 = vpop.eup %1513 }
 0x58e   :  { %v1205_v32 = vmul.f32 0.6931472, %v1514_v31 }
 0x590   :  { %v1206_v33 = vadd.f32 %v1205_v32, %v1197_v25 }
 0x592   :  { %v1207_v34 = vsub.f32 %v1191_v20, %v1206_v33 }
 0x594   :  { %1208 = vst.msk [vmem:[%s1958_s9] sm:$0xff] %vm1194_vm13, %v1207_v34 }

</bundles_post_ra>
